<compile_context>
chip_gen: v5e
topology: v5e:2x2
jax: 0.10.0
libtpu: 0.0.40
codegen_flags: <defaults>
</compile_context>

<pallas_src>
import jax
import jax.numpy as jnp
from jax.experimental import pallas as pl
from jax.experimental.pallas import tpu as pltpu


# ---------------------------------------------------------------------------
# Kernel
# ---------------------------------------------------------------------------
def _make_rope_kernel(n_inputs):
    """RoPE kernel over `n_inputs` same-shaped tensors sharing cos/sin tiles."""

    def kernel(*refs):
        x_refs = refs[:n_inputs]
        cos_ref = refs[n_inputs]          # (T_s, D//2)
        sin_ref = refs[n_inputs + 1]      # (T_s, D//2)
        o_refs = refs[n_inputs + 2:]

        cos = cos_ref[...]
        sin = sin_ref[...]
        half = x_refs[0].shape[-1] // 2

        for x_ref, o_ref in zip(x_refs, o_refs):
            x = x_ref[...]                # (T_bh, T_s, D)
            x1 = x[..., :half]
            x2 = x[..., half:]
            # x*cos + rotate_half(x)*sin  ==  [x1*c - x2*s , x2*c + x1*s]
            out = jnp.concatenate(
                [x1 * cos - x2 * sin, x2 * cos + x1 * sin], axis=-1)
            o_ref[...] = out.astype(o_ref.dtype)

    return kernel


# ---------------------------------------------------------------------------
# Tiling / wrapper
# ---------------------------------------------------------------------------
def _choose_tiles(bh, s, d, itemsize, target_bytes=1 << 20):
    """Pick (T_bh, T_s) so one x block is ~1 MiB and satisfies (8,128) rules."""
    row_bytes = d * itemsize
    max_s_rows = max(1, target_bytes // row_bytes)
    if s <= max_s_rows:
        t_s = s                                   # full S (always legal)
    else:
        t_s = max(8, (max_s_rows // 8) * 8)       # multiple of 8 (sublane)
    block_rows_bytes = t_s * row_bytes
    t_bh = max(1, min(bh, target_bytes // block_rows_bytes))
    return t_bh, t_s


def _apply_rotary(xs, cos_half, sin_half):
    """Apply RoPE to a list of same-shaped [B, H, S, D] tensors in one call."""
    n = len(xs)
    B, H, S, D = xs[0].shape
    assert D % 2 == 0, "head dim must be even for rotary embeddings"
    BH = B * H

    xs_flat = [x.reshape(BH, S, D) for x in xs]
    cos_s = cos_half[:S]                          # (S, D//2)
    sin_s = sin_half[:S]

    itemsize = jnp.dtype(xs[0].dtype).itemsize
    t_bh, t_s = _choose_tiles(BH, S, D, itemsize)
    n_s = pl.cdiv(S, t_s)
    n_bh = pl.cdiv(BH, t_bh)

    # Grid: (S-tiles slow, BH-tiles fast) -> cos/sin block resident across the
    # inner BH loop (no re-DMA of the tables).
    x_spec = pl.BlockSpec((t_bh, t_s, D), lambda si, bi: (bi, si, 0))
    tbl_spec = pl.BlockSpec((t_s, D // 2), lambda si, bi: (si, 0))

    outs = pl.pallas_call(
        _make_rope_kernel(n),
        out_shape=tuple(
            jax.ShapeDtypeStruct((BH, S, D), x.dtype) for x in xs),
        grid_spec=pltpu.PrefetchScalarGridSpec(
            num_scalar_prefetch=0,
            grid=(n_s, n_bh),
            in_specs=[x_spec] * n + [tbl_spec, tbl_spec],
            out_specs=[x_spec] * n,
        ),
        compiler_params=pltpu.CompilerParams(
            dimension_semantics=("parallel", "parallel"),
            vmem_limit_bytes=32 * 1024 * 1024,
        ),
    )(*xs_flat, cos_s, sin_s)

    if not isinstance(outs, (list, tuple)):
        outs = (outs,)
    return [o.reshape(B, H, S, D) for o in outs]


# ---------------------------------------------------------------------------
# Table construction (hoisted; mirrors the module's cos/sin cache)
# ---------------------------------------------------------------------------
def make_rope_tables(dim, seq_len, dtype=jnp.float32):
    """Half-width cos/sin tables: cos(freqs), sin(freqs) of shape (S, dim//2)."""
    inv_freq = 1.0 / (10000.0 ** (jnp.arange(0, dim, 2, dtype=jnp.float32) / dim))
    t = jnp.arange(seq_len, dtype=jnp.float32)
    freqs = jnp.outer(t, inv_freq)                # (seq_len, dim//2)
    return jnp.cos(freqs).astype(dtype), jnp.sin(freqs).astype(dtype)


def rotary_embedding_forward(q, k, tables=None):
    """Reproduces RotaryEmbedding.forward(q, k).

    q, k: [B, H, S, D].  Returns (q_rot, k_rot), same shapes/dtypes.
    `tables` (cos_half, sin_half) may be precomputed once and reused across
    calls (equivalent to the module's _cos_cached/_sin_cached).
    """
    assert q.shape[-1] == k.shape[-1]
    dim = q.shape[-1]
    seq_len = max(q.shape[-2], k.shape[-2])
    if tables is None:
        tables = make_rope_tables(dim, seq_len, dtype=q.dtype)
    cos_half, sin_half = tables

    if q.shape == k.shape:
        q_out, k_out = _apply_rotary([q, k], cos_half, sin_half)
    else:
        # Different seq lens / batch layouts: apply separately (rare path).
        (q_out,) = _apply_rotary([q], cos_half, sin_half)
        (k_out,) = _apply_rotary([k], cos_half, sin_half)
    return q_out, k_out


# ---------------------------------------------------------------------------
# Pure-JAX reference (mirrors the PyTorch code) for validation
# ---------------------------------------------------------------------------
def _reference(q, k):
    dim = q.shape[-1]
    inv_freq = 1.0 / (10000.0 ** (jnp.arange(0, dim, 2, dtype=jnp.float32) / dim))
    seq_len = max(q.shape[-2], k.shape[-2])
    t = jnp.arange(seq_len, dtype=jnp.float32)
    freqs = jnp.outer(t, inv_freq)
    emb = jnp.concatenate([freqs, freqs], axis=-1)
    cos = jnp.cos(emb)[None, None, :, :]
    sin = jnp.sin(emb)[None, None, :, :]

    def rotate_half(x):
        half = x.shape[-1] // 2
        return jnp.concatenate([-x[..., half:], x[..., :half]], axis=-1)

    def apply(x):
        c = cos[:, :, : x.shape[-2], :]
        s = sin[:, :, : x.shape[-2], :]
        return x * c + rotate_half(x) * s

    return apply(q), apply(k)


if __name__ == "__main__":
    key = jax.random.PRNGKey(0)
    kq, kk = jax.random.split(key)
    B, H, S, D = 2, 4, 8, 32
    q = jax.random.normal(kq, (B, H, S, D), dtype=jnp.float32)
    k = jax.random.normal(kk, (B, H, S, D), dtype=jnp.float32)

    # Hoisted table construction (built once, reused every forward).
    tables = make_rope_tables(D, S, dtype=q.dtype)

    q_out, k_out = rotary_embedding_forward(q, k, tables=tables)
    jax.block_until_ready((q_out, k_out))

    q_ref, k_ref = _reference(q, k)
    assert jnp.allclose(q_out, q_ref, atol=1e-5, rtol=1e-5)
    assert jnp.allclose(k_out, k_ref, atol=1e-5, rtol=1e-5)

    print("KERNEL_OK")
</pallas_src>

<mosaic_0001>
module attributes {stable_mosaic.version = 11 : i64} {
  func.func @kernel(%arg0: i32, %arg1: i32, %arg2: memref<8x8x32xf32, #tpu.memory_space<vmem>>, %arg3: memref<8x8x32xf32, #tpu.memory_space<vmem>>, %arg4: memref<8x16xf32, #tpu.memory_space<vmem>>, %arg5: memref<8x16xf32, #tpu.memory_space<vmem>>, %arg6: memref<8x8x32xf32, #tpu.memory_space<vmem>>, %arg7: memref<8x8x32xf32, #tpu.memory_space<vmem>>) attributes {dimension_semantics = [#tpu.dimension_semantics<parallel>, #tpu.dimension_semantics<parallel>], iteration_bounds = array<i64: 1, 1>, scalar_prefetch = 0 : i64, scratch_operands = 0 : i64, tpu.core_type = #tpu.core_type<tc>, window_params = [{transform_indices = @transform_0, window_bounds = array<i64: 8, 8, 32>}, {transform_indices = @transform_1, window_bounds = array<i64: 8, 8, 32>}, {transform_indices = @transform_2, window_bounds = array<i64: 8, 16>}, {transform_indices = @transform_3, window_bounds = array<i64: 8, 16>}, {transform_indices = @transform_4, window_bounds = array<i64: 8, 8, 32>}, {transform_indices = @transform_5, window_bounds = array<i64: 8, 8, 32>}]} {
    %c0 = arith.constant 0 : index
    %c0_0 = arith.constant 0 : index
    %0 = vector.load %arg4[%c0, %c0_0] : memref<8x16xf32, #tpu.memory_space<vmem>>, vector<8x16xf32>
    %c0_1 = arith.constant 0 : index
    %c0_2 = arith.constant 0 : index
    %1 = vector.load %arg5[%c0_1, %c0_2] : memref<8x16xf32, #tpu.memory_space<vmem>>, vector<8x16xf32>
    %c0_3 = arith.constant 0 : index
    %c0_4 = arith.constant 0 : index
    %c0_5 = arith.constant 0 : index
    %2 = vector.load %arg2[%c0_3, %c0_4, %c0_5] : memref<8x8x32xf32, #tpu.memory_space<vmem>>, vector<8x8x32xf32>
    %3 = vector.extract_strided_slice %2 {offsets = [0, 0, 0], sizes = [8, 8, 16], strides = [1, 1, 1]} : vector<8x8x32xf32> to vector<8x8x16xf32>
    %4 = vector.extract_strided_slice %2 {offsets = [0, 0, 16], sizes = [8, 8, 16], strides = [1, 1, 1]} : vector<8x8x32xf32> to vector<8x8x16xf32>
    %5 = vector.shape_cast %0 : vector<8x16xf32> to vector<1x8x16xf32>
    %6 = vector.broadcast %5 : vector<1x8x16xf32> to vector<8x8x16xf32>
    %7 = arith.mulf %3, %6 : vector<8x8x16xf32>
    %8 = vector.shape_cast %1 : vector<8x16xf32> to vector<1x8x16xf32>
    %9 = vector.broadcast %8 : vector<1x8x16xf32> to vector<8x8x16xf32>
    %10 = arith.mulf %4, %9 : vector<8x8x16xf32>
    %11 = arith.subf %7, %10 : vector<8x8x16xf32>
    %12 = vector.shape_cast %0 : vector<8x16xf32> to vector<1x8x16xf32>
    %13 = vector.broadcast %12 : vector<1x8x16xf32> to vector<8x8x16xf32>
    %14 = arith.mulf %4, %13 : vector<8x8x16xf32>
    %15 = vector.shape_cast %1 : vector<8x16xf32> to vector<1x8x16xf32>
    %16 = vector.broadcast %15 : vector<1x8x16xf32> to vector<8x8x16xf32>
    %17 = arith.mulf %3, %16 : vector<8x8x16xf32>
    %18 = arith.addf %14, %17 : vector<8x8x16xf32>
    %19 = tpu.concatenate %11, %18 in 2 : vector<8x8x16xf32>, vector<8x8x16xf32> -> vector<8x8x32xf32>
    %c0_6 = arith.constant 0 : index
    %c0_7 = arith.constant 0 : index
    %c0_8 = arith.constant 0 : index
    %20 = vector.load %arg6[%c0_6, %c0_7, %c0_8] : memref<8x8x32xf32, #tpu.memory_space<vmem>>, vector<8x8x32xf32>
    tpu.vector_store %arg6[%c0_6, %c0_7, %c0_8], %19 {strides = array<i32>} : memref<8x8x32xf32, #tpu.memory_space<vmem>>, vector<8x8x32xf32>,
    %c0_9 = arith.constant 0 : index
    %c0_10 = arith.constant 0 : index
    %c0_11 = arith.constant 0 : index
    %21 = vector.load %arg3[%c0_9, %c0_10, %c0_11] : memref<8x8x32xf32, #tpu.memory_space<vmem>>, vector<8x8x32xf32>
    %22 = vector.extract_strided_slice %21 {offsets = [0, 0, 0], sizes = [8, 8, 16], strides = [1, 1, 1]} : vector<8x8x32xf32> to vector<8x8x16xf32>
    %23 = vector.extract_strided_slice %21 {offsets = [0, 0, 16], sizes = [8, 8, 16], strides = [1, 1, 1]} : vector<8x8x32xf32> to vector<8x8x16xf32>
    %24 = vector.shape_cast %0 : vector<8x16xf32> to vector<1x8x16xf32>
    %25 = vector.broadcast %24 : vector<1x8x16xf32> to vector<8x8x16xf32>
    %26 = arith.mulf %22, %25 : vector<8x8x16xf32>
    %27 = vector.shape_cast %1 : vector<8x16xf32> to vector<1x8x16xf32>
    %28 = vector.broadcast %27 : vector<1x8x16xf32> to vector<8x8x16xf32>
    %29 = arith.mulf %23, %28 : vector<8x8x16xf32>
    %30 = arith.subf %26, %29 : vector<8x8x16xf32>
    %31 = vector.shape_cast %0 : vector<8x16xf32> to vector<1x8x16xf32>
    %32 = vector.broadcast %31 : vector<1x8x16xf32> to vector<8x8x16xf32>
    %33 = arith.mulf %23, %32 : vector<8x8x16xf32>
    %34 = vector.shape_cast %1 : vector<8x16xf32> to vector<1x8x16xf32>
    %35 = vector.broadcast %34 : vector<1x8x16xf32> to vector<8x8x16xf32>
    %36 = arith.mulf %22, %35 : vector<8x8x16xf32>
    %37 = arith.addf %33, %36 : vector<8x8x16xf32>
    %38 = tpu.concatenate %30, %37 in 2 : vector<8x8x16xf32>, vector<8x8x16xf32> -> vector<8x8x32xf32>
    %c0_12 = arith.constant 0 : index
    %c0_13 = arith.constant 0 : index
    %c0_14 = arith.constant 0 : index
    %39 = vector.load %arg7[%c0_12, %c0_13, %c0_14] : memref<8x8x32xf32, #tpu.memory_space<vmem>>, vector<8x8x32xf32>
    tpu.vector_store %arg7[%c0_12, %c0_13, %c0_14], %38 {strides = array<i32>} : memref<8x8x32xf32, #tpu.memory_space<vmem>>, vector<8x8x32xf32>,
    return
  }
  func.func @transform_0(%arg0: i32, %arg1: i32) -> (i32, i32, i32) {
    %c0_i32 = arith.constant 0 : i32
    %c0_i32_0 = arith.constant 0 : i32
    return %arg1, %arg0, %c0_i32 : i32, i32, i32
  }
  func.func @transform_1(%arg0: i32, %arg1: i32) -> (i32, i32, i32) {
    %c0_i32 = arith.constant 0 : i32
    %c0_i32_0 = arith.constant 0 : i32
    return %arg1, %arg0, %c0_i32 : i32, i32, i32
  }
  func.func @transform_2(%arg0: i32, %arg1: i32) -> (i32, i32) {
    %c0_i32 = arith.constant 0 : i32
    %c0_i32_0 = arith.constant 0 : i32
    return %arg0, %c0_i32 : i32, i32
  }
  func.func @transform_3(%arg0: i32, %arg1: i32) -> (i32, i32) {
    %c0_i32 = arith.constant 0 : i32
    %c0_i32_0 = arith.constant 0 : i32
    return %arg0, %c0_i32 : i32, i32
  }
  func.func @transform_4(%arg0: i32, %arg1: i32) -> (i32, i32, i32) {
    %c0_i32 = arith.constant 0 : i32
    %c0_i32_0 = arith.constant 0 : i32
    return %arg1, %arg0, %c0_i32 : i32, i32, i32
  }
  func.func @transform_5(%arg0: i32, %arg1: i32) -> (i32, i32, i32) {
    %c0_i32 = arith.constant 0 : i32
    %c0_i32_0 = arith.constant 0 : i32
    return %arg1, %arg0, %c0_i32 : i32, i32, i32
  }
}

</mosaic_0001>

<bundles_post_ra>
// kernel: tpu_custom_call.1
= control target key start
LH: loop header
LB: loop body
LE: loop exit
PB: predicated region body
PF: predicated region fallthrough
CT: control target
= control target key end

     0   :  { %11 = vsyncpa [#allocation3], 0  ;;  %s867_s0 = inlined_call_operand.hbm [shape: f32[8,8,32], index: 0, kind: input, shape index: {}]   ;;  %s868_s1 = inlined_call_operand.hbm [shape: f32[8,8,32], index: 1, kind: input, shape index: {}]   ;;  %s869_s2 = inlined_call_operand.hbm [shape: f32[8,16], index: 2, kind: input, shape index: {}]   ;;  %s870_s3 = inlined_call_operand.hbm [shape: f32[8,16], index: 3, kind: input, shape index: {}]   ;;  %s871_s4 = inlined_call_operand.hbm [shape: f32[8,8,32], index: 4, kind: output, shape index: {0}]   ;;  %s872_s5 = inlined_call_operand.hbm [shape: f32[8,8,32], index: 5, kind: output, shape index: {1}]  }
   0x1   :  { %12 = vsyncpa [#allocation6], 0 }
   0x2   :  { %13 = vsyncpa [#allocation9], 0 }
   0x3   :  { %14 = vsyncpa [#allocation4], 0 }
   0x4   :  { %15 = vsyncpa [#allocation12], 0  ;;  %s33_s20 = sshll.u32 %s868_s1, 4  ;;  %s567_s21 = smov [#allocation5]   ;;  %s34_s20 = int_to_ptr.hbm [resolvable:$true] %s33_s20 }
   0x5   :  { %s35_s22 = sshll.u32 %s567_s21, 4  ;;  %s20_s25 = sshll.u32 %s867_s0, 4  ;;  %s36_s22 = int_to_ptr.vmem [resolvable:$true] %s35_s22  ;;  %s21_s25 = int_to_ptr.hbm [resolvable:$true] %s20_s25 }
   0x6   :  { %s568_s26 = smov 128   ;;  %s569_s27 = smov 8  }
   0x7   :  { %41 = dma.hbm_to_vmem [thread:$0]  %s34_s20, 1024, %s36_s22, [#allocation6], %s568_s26, %s568_s26, %s569_s27  }
   0x8   :  { %s570_s28 = smov [#allocation2]   ;;  %s47_s1 = sshll.u32 %s869_s2, 4  ;;  %s48_s1 = int_to_ptr.hbm [resolvable:$true] %s47_s1 }
   0x9   :  { %s22_s29 = sshll.u32 %s570_s28, 4  ;;  %s58_s8 = sshll.u32 %s870_s3, 4  ;;  %s23_s29 = int_to_ptr.vmem [resolvable:$true] %s22_s29  ;;  %s59_s8 = int_to_ptr.hbm [resolvable:$true] %s58_s8 }
   0xa   :  { %28 = dma.hbm_to_vmem [thread:$0]  %s21_s25, 1024, %s23_s29, [#allocation3], %s568_s26, %s568_s26, %s569_s27  }
   0xb   :  { %s571_s9 = smov [#allocation7]   ;;  %s572_s11 = smov [#allocation8]  }
   0xc   :  { %s49_s10 = sshll.u32 %s571_s9, 4  ;;  %s60_s12 = sshll.u32 %s572_s11, 4  ;;  %s50_s10 = int_to_ptr.vmem [resolvable:$true] %s49_s10  ;;  %s61_s12 = int_to_ptr.vmem [resolvable:$true] %s60_s12 }
   0xd   :  { %52 = dma.hbm_to_vmem [thread:$0]  %s48_s1, 128, %s50_s10, [#allocation6]  }
   0xe   :  { %63 = dma.hbm_to_vmem [thread:$0]  %s59_s8, 128, %s61_s12, [#allocation9]  }
   0xf   :  { %557 = dma.done.wait [#allocation3], 1024  }
  0x10   :  { %558 = vsyncadd [#allocation3], 4294966272 }
  0x11   :  { %559 = dma.done.wait [#allocation6], 1152  }
  0x12   :  { %560 = vsyncadd [#allocation6], 4294966144 }
  0x13   :  { %561 = dma.done.wait [#allocation9], 128  }
  0x14   :  { %562 = vsyncadd [#allocation9], 4294967168  ;;  %v625_v0 = vld [vmem:[#allocation8] sm:$0xff]  ;;  %v627_v1 = vld [vmem:[#allocation2] sm:$0xff]  ;;  %s573_s2 = smov 16   ;;  %s574_s3 = smov 112  }
  0x15   :  { %99 = vrot.lane.b32.xlu0 %v625_v0, %s573_s2  ;;  %v162_v2 = vmul.f32 %v627_v1, %v625_v0  ;;  %v633_v3 = vld [vmem:[#allocation2 + $0x8] sm:$0xff]  ;;  %v638_v5 = vld [vmem:[#allocation2 + $0x18] sm:$0xff]  ;;  %v641_v6 = vld [vmem:[#allocation7] sm:$0xff]  ;;  %vm210_vm0 = vcmask 130048   ;;  %vm219_vm1 = vcmask 261120   ;;  %s575_s13 = smov [#allocation10]  }
  0x16   :  { %v163_v4 = vmul.f32 %v633_v3, %v625_v0  ;;  %v643_v7 = vld [vmem:[#allocation2 + $0x20] sm:$0xff]  ;;  %v165_v8 = vmul.f32 %v638_v5, %v625_v0  ;;  %v651_v10 = vld [vmem:[#allocation2 + $0x10] sm:$0xff]  ;;  %v659_v13 = vld [vmem:[#allocation2 + $0x38] sm:$0xff]  ;;  %v93_v62 = vmul.f32 %v638_v5, %v641_v6  ;;  %s368_s14 = sshll.u32 %s575_s13, 4  ;;  %s370_s17 = sshll.u32 %s871_s4, 4  ;;  %s369_s14 = int_to_ptr.vmem [resolvable:$true] %s368_s14  ;;  %s371_s17 = int_to_ptr.hbm [resolvable:$true] %s370_s17 }
  0x17   :  { %178 = vrot.lane.b32.xlu1 %v162_v2, %s573_s2  ;;  %v166_v9 = vmul.f32 %v643_v7, %v625_v0  ;;  %v654_v11 = vld [vmem:[#allocation2 + $0x30] sm:$0xff]  ;;  %v164_v12 = vmul.f32 %v651_v10, %v625_v0  ;;  %v169_v15 = vmul.f32 %v659_v13, %v625_v0  ;;  %v666_v16 = vld [vmem:[#allocation2 + $0x28] sm:$0xff]  ;;  %v674_v19 = vld [vmem:[#allocation5] sm:$0xff]  ;;  %s576_s4 = smov [#allocation11]   ;;  %s383_s21 = sshll.u32 %s872_s5, 4  ;;  %s384_s21 = int_to_ptr.hbm [resolvable:$true] %s383_s21 }
  0x18   :  { %180 = vrot.lane.b32.xlu2 %v163_v4, %s573_s2  ;;  %v168_v14 = vmul.f32 %v654_v11, %v625_v0  ;;  %v669_v17 = vld [vmem:[#allocation5 + $0x10] sm:$0xff]  ;;  %v167_v18 = vmul.f32 %v666_v16, %v625_v0  ;;  %v300_v21 = vmul.f32 %v674_v19, %v625_v0  ;;  %v681_v22 = vld [vmem:[#allocation5 + $0x8] sm:$0xff]  ;;  %v687_v24 = vld [vmem:[#allocation5 + $0x18] sm:$0xff]  ;;  %s381_s18 = sshll.u32 %s576_s4, 4  ;;  %s382_s18 = int_to_ptr.vmem [resolvable:$true] %s381_s18 }
  0x19   :  { %v302_v20 = vmul.f32 %v669_v17, %v625_v0  ;;  %v301_v23 = vmul.f32 %v681_v22, %v625_v0  ;;  %v303_v25 = vmul.f32 %v687_v24, %v625_v0  ;;  %v692_v26 = vld [vmem:[#allocation5 + $0x20] sm:$0xff]  ;;  %v722_v41 = vld [vmem:[#allocation5 + $0x28] sm:$0xff]  ;;  %v724_v42 = vld [vmem:[#allocation5 + $0x30] sm:$0xff] }
  0x1a   :  { %v304_v27 = vmul.f32 %v692_v26, %v625_v0  ;;  %v732_v46 = vld [vmem:[#allocation5 + $0x38] sm:$0xff]  ;;  %v306_v47 = vmul.f32 %v724_v42, %v625_v0  ;;  %v305_v51 = vmul.f32 %v722_v41, %v625_v0 }
  0x1b   :  { %v307_v48 = vmul.f32 %v732_v46, %v625_v0 }
  0x1d   :  { %151 = vrot.lane.b32.xlu0 %v641_v6, %s573_s2 }
  0x1f   :  { %184 = vrot.lane.b32.xlu1 %v165_v8, %s573_s2 }
  0x20   :  { %186 = vrot.lane.b32.xlu2 %v166_v9, %s573_s2  ;;  %v94_v9 = vmul.f32 %v643_v7, %v641_v6 }
  0x25   :  { %182 = vrot.lane.b32.xlu0 %v164_v12, %s573_s2 }
  0x27   :  { %190 = vrot.lane.b32.xlu1 %v168_v14, %s573_s2 }
  0x28   :  { %192 = vrot.lane.b32.xlu2 %v169_v15, %s573_s2 }
  0x2d   :  { %188 = vrot.lane.b32.xlu0 %v167_v18, %s573_s2 }
  0x2f   :  { %320 = vrot.lane.b32.xlu1 %v302_v20, %s573_s2 }
  0x30   :  { %316 = vrot.lane.b32.xlu2 %v300_v21, %s573_s2 }
  0x35   :  { %318 = vrot.lane.b32.xlu0 %v301_v23, %s573_s2  ;;  %v97_v23 = vmul.f32 %v659_v13, %v641_v6 }
  0x38   :  { %322 = vrot.lane.b32.xlu2 %v303_v25, %s573_s2 }
  0x3d   :  { %324 = vrot.lane.b32.xlu0 %v304_v27, %s573_s2 }
  0x72   :  { %v181_v50 = vpop.permute.xlu2 %180 }
  0x7a   :  { %v187_v52 = vpop.permute.xlu2 %186 }
  0x82   :  { %v193_v53 = vpop.permute.xlu2 %192 }
  0x87   :  { %v100_v28 = vpop.permute.xlu0 %99 }
  0x88   :  { %v105_v29 = vmul.f32 %v100_v28, %v638_v5  ;;  %v103_v30 = vmul.f32 %v100_v28, %v633_v3  ;;  %v102_v31 = vmul.f32 %v100_v28, %v627_v1  ;;  %v106_v32 = vmul.f32 %v100_v28, %v643_v7 }
  0x89   :  { %v104_v33 = vmul.f32 %v100_v28, %v651_v10  ;;  %v107_v34 = vmul.f32 %v100_v28, %v666_v16  ;;  %v109_v35 = vmul.f32 %v100_v28, %v659_v13  ;;  %v108_v36 = vmul.f32 %v100_v28, %v654_v11  ;;  %v179_v56 = vpop.permute.xlu1 %178 }
  0x8a   :  { %124 = vrot.lane.b32.xlu2 %v105_v29, %s574_s3  ;;  %120 = vrot.lane.b32.xlu1 %v103_v30, %s574_s3  ;;  %v244_v37 = vmul.f32 %v674_v19, %v100_v28  ;;  %v246_v38 = vmul.f32 %v669_v17, %v100_v28  ;;  %v245_v39 = vmul.f32 %v681_v22, %v100_v28  ;;  %v747_v55 = vpop.permute.xlu2 %316 }
  0x8b   :  { %118 = vrot.lane.b32.xlu0 %v102_v31, %s574_s3  ;;  %v247_v40 = vmul.f32 %v687_v24, %v100_v28  ;;  %v249_v43 = vmul.f32 %v722_v41, %v100_v28  ;;  %v248_v44 = vmul.f32 %v692_v26, %v100_v28  ;;  %v250_v45 = vmul.f32 %v724_v42, %v100_v28 }
  0x8c   :  { %v251_v49 = vmul.f32 %v732_v46, %v100_v28 }
  0x8f   :  { %v745_v54 = vpop.permute.xlu0 %151 }
  0x90   :  { %v157_v60 = vmul.f32 %v745_v54, %v638_v5  ;;  %v158_v8 = vmul.f32 %v745_v54, %v643_v7  ;;  %v161_v21 = vmul.f32 %v745_v54, %v659_v13  ;;  %v294_v31 = vmul.f32 %v669_v17, %v745_v54 }
  0x91   :  { %v185_v59 = vpop.permute.xlu1 %184  ;;  %v155_v13 = vmul.f32 %v745_v54, %v633_v3 }
  0x92   :  { %126 = vrot.lane.b32.xlu2 %v106_v32, %s574_s3  ;;  %122 = vrot.lane.b32.xlu1 %v104_v33, %s574_s3  ;;  %v749_v58 = vpop.permute.xlu2 %322  ;;  %v205_v0 = vadd.f32 %v185_v59, %v157_v60  ;;  %v206_v5 = vadd.f32 %v187_v52, %v158_v8  ;;  %v209_v28 = vadd.f32 %v193_v53, %v161_v21 }
  0x93   :  { %128 = vrot.lane.b32.xlu0 %v107_v34, %s574_s3  ;;  %v238_v32 = vmul.f32 %v669_v17, %v641_v6  ;;  %v91_v33 = vmul.f32 %v633_v3, %v641_v6  ;;  %v154_v34 = vmul.f32 %v745_v54, %v627_v1  ;;  %v239_v21 = vmul.f32 %v687_v24, %v641_v6 }
  0x95   :  { %v202_v17 = vadd.f32 %v179_v56, %v154_v34 }
  0x97   :  { %v183_v57 = vpop.permute.xlu0 %182 }
  0x99   :  { %v191_v12 = vpop.permute.xlu1 %190 }
  0x9a   :  { %132 = vrot.lane.b32.xlu2 %v109_v35, %s574_s3  ;;  %130 = vrot.lane.b32.xlu1 %v108_v36, %s574_s3  ;;  %v90_v35 = vmul.f32 %v627_v1, %v641_v6  ;;  %v156_v1 = vmul.f32 %v745_v54, %v651_v10 }
  0x9b   :  { %260 = vrot.lane.b32.xlu0 %v244_v37, %s574_s3 }
  0x9c   :  { %v204_v53 = vadd.f32 %v183_v57, %v156_v1  ;;  %v292_v57 = vmul.f32 %v674_v19, %v745_v54 }
  0x9f   :  { %v189_v61 = vpop.permute.xlu0 %188 }
  0xa1   :  { %v321_v25 = vpop.permute.xlu1 %320 }
  0xa2   :  { %264 = vrot.lane.b32.xlu2 %v246_v38, %s574_s3  ;;  %262 = vrot.lane.b32.xlu1 %v245_v39, %s574_s3  ;;  %v342_v38 = vadd.f32 %v321_v25, %v294_v31 }
  0xa3   :  { %266 = vrot.lane.b32.xlu0 %v247_v40, %s574_s3 }
  0xa7   :  { %v761_v14 = vpop.permute.xlu0 %318 }
  0xaa   :  { %270 = vrot.lane.b32.xlu2 %v249_v43, %s574_s3  ;;  %268 = vrot.lane.b32.xlu1 %v248_v44, %s574_s3  ;;  %v203_v43 = vadd.f32 %v181_v50, %v155_v13  ;;  %v159_v50 = vmul.f32 %v745_v54, %v666_v16 }
  0xab   :  { %272 = vrot.lane.b32.xlu0 %v250_v45, %s574_s3 }
  0xac   :  { %v207_v60 = vadd.f32 %v189_v61, %v159_v50  ;;  %v236_v61 = vmul.f32 %v674_v19, %v641_v6 }
  0xaf   :  { %v769_v7 = vpop.permute.xlu0 %324 }
  0xb2   :  { %328 = vrot.lane.b32.xlu2 %v306_v47, %s573_s2  ;;  %274 = vrot.lane.b32.xlu1 %v251_v49, %s574_s3  ;;  %v92_v49 = vmul.f32 %v651_v10, %v641_v6 }
  0xb3   :  { %330 = vrot.lane.b32.xlu0 %v307_v48, %s573_s2 }
  0xba   :  { %326 = vrot.lane.b32.xlu1 %v305_v51, %s573_s2  ;;  %v95_v51 = vmul.f32 %v666_v16, %v641_v6  ;;  %v96_v16 = vmul.f32 %v654_v11, %v641_v6 }
  0xe4   :  { %v125_v63 = vpop.permute.xlu2 %124 }
  0xe5   :  { %v145_v2 = vsub.f32 %v93_v62, %v125_v63 }
  0xe7   :  { %v214_v4 = vsel %vm210_vm0, %v145_v2, %v205_v0  ;;  %v160_v0 = vmul.f32 %v745_v54, %v654_v11 }
  0xe8   :  { %223 = vst.msk [vmem:[#allocation10 + $0x18] sm:$0xff] %vm219_vm1, %v214_v4 }
  0xe9   :  { %v208_v4 = vadd.f32 %v191_v12, %v160_v0  ;;  %v237_v12 = vmul.f32 %v681_v22, %v641_v6 }
  0xec   :  { %v127_v15 = vpop.permute.xlu2 %126 }
  0xed   :  { %v146_v18 = vsub.f32 %v94_v9, %v127_v15  ;;  %v340_v15 = vadd.f32 %v747_v55, %v292_v57  ;;  %v295_v55 = vmul.f32 %v687_v24, %v745_v54  ;;  %v240_v24 = vmul.f32 %v692_v26, %v641_v6 }
  0xef   :  { %v215_v20 = vsel %vm210_vm0, %v146_v18, %v206_v5  ;;  %v293_v18 = vmul.f32 %v681_v22, %v745_v54 }
  0xf0   :  { %224 = vst.msk [vmem:[#allocation10 + $0x20] sm:$0xff] %vm219_vm1, %v215_v20 }
  0xf1   :  { %v341_v25 = vadd.f32 %v761_v14, %v293_v18  ;;  %v242_v14 = vmul.f32 %v724_v42, %v641_v6 }
  0xf4   :  { %v133_v27 = vpop.permute.xlu2 %132 }
  0xf5   :  { %v149_v29 = vsub.f32 %v97_v23, %v133_v27 }
  0xf7   :  { %v218_v30 = vsel %vm210_vm0, %v149_v29, %v209_v28  ;;  %v343_v29 = vadd.f32 %v749_v58, %v295_v55  ;;  %v298_v58 = vmul.f32 %v724_v42, %v745_v54  ;;  %v299_v42 = vmul.f32 %v732_v46, %v745_v54 }
  0xf8   :  { %227 = vst.msk [vmem:[#allocation10 + $0x38] sm:$0xff] %vm219_vm1, %v218_v30 }
  0xfc   :  { %v265_v36 = vpop.permute.xlu2 %264  ;;  %v121_v37 = vpop.permute.xlu1 %120 }
  0xfd   :  { %v286_v39 = vsub.f32 %v238_v32, %v265_v36  ;;  %v143_v40 = vsub.f32 %v91_v33, %v121_v37  ;;  %v119_v44 = vpop.permute.xlu0 %118  ;;  %v296_v32 = vmul.f32 %v692_v26, %v745_v54 }
  0xfe   :  { %v142_v45 = vsub.f32 %v90_v35, %v119_v44 }
  0xff   :  { %v350_v47 = vsel %vm210_vm0, %v286_v39, %v342_v38  ;;  %v212_v48 = vsel %vm210_vm0, %v143_v40, %v203_v43  ;;  %v344_v34 = vadd.f32 %v769_v7, %v296_v32  ;;  %v243_v40 = vmul.f32 %v732_v46, %v641_v6 }
 0x100   :  { %358 = vst.msk [vmem:[#allocation11 + $0x10] sm:$0xff] %vm219_vm1, %v350_v47  ;;  %v211_v3 = vsel %vm210_vm0, %v142_v45, %v202_v17  ;;  %v241_v47 = vmul.f32 %v722_v41, %v641_v6 }
 0x101   :  { %221 = vst.msk [vmem:[#allocation10 + $0x8] sm:$0xff] %vm219_vm1, %v212_v48  ;;  %v297_v48 = vmul.f32 %v722_v41, %v745_v54 }
 0x102   :  { %220 = vst.msk [vmem:[#allocation10] sm:$0xff] %vm219_vm1, %v211_v3 }
 0x104   :  { %v123_v52 = vpop.permute.xlu1 %122  ;;  %v271_v20 = vpop.permute.xlu2 %270 }
 0x105   :  { %v144_v56 = vsub.f32 %v92_v49, %v123_v52  ;;  %v129_v59 = vpop.permute.xlu0 %128  ;;  %v289_v3 = vsub.f32 %v241_v47, %v271_v20 }
 0x106   :  { %v147_v62 = vsub.f32 %v95_v51, %v129_v59 }
 0x107   :  { %v213_v63 = vsel %vm210_vm0, %v144_v56, %v204_v53 }
 0x108   :  { %222 = vst.msk [vmem:[#allocation10 + $0x10] sm:$0xff] %vm219_vm1, %v213_v63  ;;  %v216_v10 = vsel %vm210_vm0, %v147_v62, %v207_v60 }
 0x109   :  { %225 = vst.msk [vmem:[#allocation10 + $0x28] sm:$0xff] %vm219_vm1, %v216_v10 }
 0x10c   :  { %v131_v2 = vpop.permute.xlu1 %130  ;;  %v329_v33 = vpop.permute.xlu2 %328 }
 0x10d   :  { %v148_v8 = vsub.f32 %v96_v16, %v131_v2  ;;  %v261_v9 = vpop.permute.xlu0 %260  ;;  %v346_v37 = vadd.f32 %v329_v33, %v298_v58 }
 0x10e   :  { %v284_v5 = vsub.f32 %v236_v61, %v261_v9 }
 0x10f   :  { %v217_v11 = vsel %vm210_vm0, %v148_v8, %v208_v4 }
 0x110   :  { %226 = vst.msk [vmem:[#allocation10 + $0x30] sm:$0xff] %vm219_vm1, %v217_v11  ;;  %v348_v19 = vsel %vm210_vm0, %v284_v5, %v340_v15 }
 0x111   :  { %356 = vst.msk [vmem:[#allocation11] sm:$0xff] %vm219_vm1, %v348_v19  ;;  %376 = dma.vmem_to_hbm [thread:$0]  %s369_s14, 1024, %s371_s17, [#allocation4], %s568_s26, %s568_s26, %s569_s27  }
 0x114   :  { %v263_v23 = vpop.permute.xlu1 %262 }
 0x115   :  { %v285_v27 = vsub.f32 %v237_v12, %v263_v23  ;;  %v267_v28 = vpop.permute.xlu0 %266 }
 0x116   :  { %v287_v30 = vsub.f32 %v239_v21, %v267_v28 }
 0x117   :  { %v349_v22 = vsel %vm210_vm0, %v285_v27, %v341_v25 }
 0x118   :  { %357 = vst.msk [vmem:[#allocation11 + $0x8] sm:$0xff] %vm219_vm1, %v349_v22  ;;  %v351_v31 = vsel %vm210_vm0, %v287_v30, %v343_v29 }
 0x119   :  { %359 = vst.msk [vmem:[#allocation11 + $0x18] sm:$0xff] %vm219_vm1, %v351_v31 }
 0x11c   :  { %v269_v13 = vpop.permute.xlu1 %268 }
 0x11d   :  { %v288_v35 = vsub.f32 %v240_v24, %v269_v13  ;;  %v273_v36 = vpop.permute.xlu0 %272 }
 0x11e   :  { %v290_v38 = vsub.f32 %v242_v14, %v273_v36 }
 0x11f   :  { %v352_v39 = vsel %vm210_vm0, %v288_v35, %v344_v34 }
 0x120   :  { %360 = vst.msk [vmem:[#allocation11 + $0x20] sm:$0xff] %vm219_vm1, %v352_v39  ;;  %v354_v26 = vsel %vm210_vm0, %v290_v38, %v346_v37 }
 0x121   :  { %362 = vst.msk [vmem:[#allocation11 + $0x30] sm:$0xff] %vm219_vm1, %v354_v26 }
 0x124   :  { %v275_v43 = vpop.permute.xlu1 %274 }
 0x125   :  { %v291_v7 = vsub.f32 %v243_v40, %v275_v43  ;;  %v331_v44 = vpop.permute.xlu0 %330 }
 0x126   :  { %v347_v17 = vadd.f32 %v331_v44, %v299_v42 }
 0x128   :  { %v355_v45 = vsel %vm210_vm0, %v291_v7, %v347_v17 }
 0x129   :  { %363 = vst.msk [vmem:[#allocation11 + $0x38] sm:$0xff] %vm219_vm1, %v355_v45 }
 0x12c   :  { %v327_v46 = vpop.permute.xlu1 %326 }
 0x12d   :  { %v345_v1 = vadd.f32 %v327_v46, %v297_v48 }
 0x12f   :  { %v353_v49 = vsel %vm210_vm0, %v289_v3, %v345_v1 }
 0x130   :  { %361 = vst.msk [vmem:[#allocation11 + $0x28] sm:$0xff] %vm219_vm1, %v353_v49 }
 0x131   :  { %389 = dma.vmem_to_hbm [thread:$0]  %s382_s18, 1024, %s384_s21, [#allocation12], %s568_s26, %s568_s26, %s569_s27  }
 0x132   :  { %563 = dma.done.wait [#allocation4], 1024  }
 0x133   :  { %564 = vsyncadd [#allocation4], 4294966272 }
 0x134   :  { %565 = dma.done.wait [#allocation12], 1024  }
 0x135   :  { %566 = vsyncadd [#allocation12], 4294966272 }
 0x136   :  { %398 = vsyncpa [#allocation3], 1 }
 0x137   :  { %399 = vsyncpa [#allocation6], 1 }
 0x138   :  { %400 = vsyncpa [#allocation9], 1 }
 0x139   :  { %401 = vsyncpa [#allocation4], 1 }
 0x13a   :  { %402 = vsyncpa [#allocation12], 1 }

</bundles_post_ra>
